<compile_context>
chip_gen: v7x
topology: tpu7x:2x2x1
jax: 0.10.0
libtpu: 0.0.40
codegen_flags: <defaults>
</compile_context>

<pallas_src>
import functools

import jax
import jax.numpy as jnp
from jax.experimental import pallas as pl
from jax.experimental.pallas import tpu as pltpu


def _layernorm(y, gamma, beta, eps=1e-5):
    mean = jnp.mean(y, axis=-1, keepdims=True)
    var = jnp.mean((y - mean) ** 2, axis=-1, keepdims=True)
    return (y - mean) * jax.lax.rsqrt(var + eps) * gamma + beta


# ----------------------------------------------------------------------------
# Kernel 1: fused Q/K/V projection.  One (TM, D) x (D, 3D) matmul per row tile;
#           weight/bias blocks have a constant index_map so they stay resident.
# ----------------------------------------------------------------------------
def qkv_kernel(x_ref, w_ref, b_ref, qkv_ref):
    qkv_ref[...] = (
        jnp.dot(x_ref[...], w_ref[...], preferred_element_type=jnp.float32)
        + b_ref[...]
    )


# ----------------------------------------------------------------------------
# Kernel 2: scaled-dot-product attention core; a group of G heads per grid step.
#   scores = q @ k^T * scale ; softmax(dim=-1) ; ctx = attn @ v
# ----------------------------------------------------------------------------
def sdpa_kernel(q_ref, k_ref, v_ref, ctx_ref, attn_ref, *, scale):
    q = q_ref[...]                                   # (G, S, dh)
    k = k_ref[...]                                   # (G, S, dh)
    v = v_ref[...]                                   # (G, S, dh)
    scores = jnp.einsum("gqd,gkd->gqk", q, k,
                        preferred_element_type=jnp.float32) * scale
    m = jnp.max(scores, axis=-1, keepdims=True)
    p = jnp.exp(scores - m)
    denom = jnp.sum(p, axis=-1, keepdims=True)
    attn = p * pl.reciprocal(denom)                  # exact reciprocal (matches torch softmax)
    attn_ref[...] = attn
    ctx_ref[...] = jnp.einsum("gqk,gkd->gqd", attn, v,
                              preferred_element_type=jnp.float32)


# ----------------------------------------------------------------------------
# Kernel 3: fused  proj + residual + LN1 + FFN(relu) + residual + LN2,
#           row-tiled over N.  All ops are row-local, so fusion is exact.
#           Conv1d(kernel_size=1) == per-position Linear (weights pre-transposed).
# ----------------------------------------------------------------------------
def post_attn_kernel(ctx_ref, x_ref,
                     wo_ref, bo_ref, g1_ref, b1_ref,
                     w1_ref, bf1_ref, w2_ref, bf2_ref,
                     g2_ref, b2_ref, out_ref):
    ctx = ctx_ref[...]
    x = x_ref[...]
    proj = jnp.dot(ctx, wo_ref[...], preferred_element_type=jnp.float32) + bo_ref[...]
    y1 = _layernorm(x + proj, g1_ref[...], b1_ref[...])          # MHA output
    h = jnp.maximum(
        jnp.dot(y1, w1_ref[...], preferred_element_type=jnp.float32) + bf1_ref[...],
        0.0)
    o = jnp.dot(h, w2_ref[...], preferred_element_type=jnp.float32) + bf2_ref[...]
    out_ref[...] = _layernorm(y1 + o, g2_ref[...], b2_ref[...])  # FFN output


# ----------------------------------------------------------------------------
# Tiling helpers
# ----------------------------------------------------------------------------
def _row_tile(n, cap=256):
    """Row tile over N: full array if small, else a 128-lane/8-sublane friendly cap."""
    return n if n <= cap else cap


def _head_group(bh, s, dh, budget_bytes=4 << 20):
    """Largest divisor of BH whose per-step f32 footprint fits the budget."""
    per_head = (4 * s * dh + s * s) * 4              # q,k,v,ctx + attn (f32)
    g = max(1, min(bh, budget_bytes // max(per_head, 1)))
    while bh % g:
        g -= 1
    return g


# ----------------------------------------------------------------------------
# Wrapper: EncoderLayer.forward(inputs, attn_mask=None, statement_label=False)
# ----------------------------------------------------------------------------
def encoder_layer(x, params, num_heads):
    B, S, D = x.shape
    dh = D // num_heads
    BH = B * num_heads
    N = B * S
    F = params["w1"].shape[0]
    f32 = jnp.float32

    x2 = x.reshape(N, D)

    # Pre-transpose / fuse weights once per call (wrapper-side XLA ops, not per
    # grid step).  nn.Linear / Conv1d store (out, in); kernels want (in, out).
    wqkv_t = jnp.concatenate([params["wq"], params["wk"], params["wv"]], axis=0).T
    bqkv = jnp.concatenate([params["bq"], params["bk"], params["bv"]], axis=1)
    wo_t = params["wo"].T
    w1_t = params["w1"].T
    w2_t = params["w2"].T

    TM = _row_tile(N)
    row_grid = (pl.cdiv(N, TM),)
    par1 = pltpu.CompilerParams(dimension_semantics=("parallel",))

    # -- fused Q/K/V projection: (N, D) -> (N, 3D) lane-dense slab --
    qkv = pl.pallas_call(
        qkv_kernel,
        grid=row_grid,
        out_shape=jax.ShapeDtypeStruct((N, 3 * D), f32),
        in_specs=[pl.BlockSpec((TM, D), lambda i: (i, 0)),
                  pl.BlockSpec((D, 3 * D), lambda i: (0, 0)),
                  pl.BlockSpec((1, 3 * D), lambda i: (0, 0))],
        out_specs=pl.BlockSpec((TM, 3 * D), lambda i: (i, 0)),
        compiler_params=par1,
    )(x2, wqkv_t, bqkv)

    # PyTorch's .view(B*H, -1, dh) == row-major reshape (no head transpose).
    qh = qkv[:, :D].reshape(BH, S, dh)
    kh = qkv[:, D:2 * D].reshape(BH, S, dh)
    vh = qkv[:, 2 * D:].reshape(BH, S, dh)

    # Faithful to the module: scale = (key.size(-1) // num_heads) ** -0.5
    scale = float((dh // num_heads) ** (-0.5))

    # -- attention core, G heads per grid step --
    # TODO(synk): for very long S, switch to flash-style query tiling; here the
    # dense (BH, S, S) attention matrix is part of the module's return contract.
    G = _head_group(BH, S, dh)
    ctx, attn = pl.pallas_call(
        functools.partial(sdpa_kernel, scale=scale),
        grid=(BH // G,),
        out_shape=(jax.ShapeDtypeStruct((BH, S, dh), f32),
                   jax.ShapeDtypeStruct((BH, S, S), f32)),
        in_specs=[pl.BlockSpec((G, S, dh), lambda i: (i, 0, 0))] * 3,
        out_specs=(pl.BlockSpec((G, S, dh), lambda i: (i, 0, 0)),
                   pl.BlockSpec((G, S, S), lambda i: (i, 0, 0))),
        compiler_params=par1,
    )(qh, kh, vh)

    ctx2 = ctx.reshape(N, D)

    # -- fused final projection + LN1 + FFN + LN2, row-tiled --
    out = pl.pallas_call(
        post_attn_kernel,
        grid=row_grid,
        out_shape=jax.ShapeDtypeStruct((N, D), f32),
        in_specs=[
            pl.BlockSpec((TM, D), lambda i: (i, 0)),   # ctx
            pl.BlockSpec((TM, D), lambda i: (i, 0)),   # residual x
            pl.BlockSpec((D, D), lambda i: (0, 0)),    # wo_t
            pl.BlockSpec((1, D), lambda i: (0, 0)),    # bo
            pl.BlockSpec((1, D), lambda i: (0, 0)),    # ln1_g
            pl.BlockSpec((1, D), lambda i: (0, 0)),    # ln1_b
            pl.BlockSpec((D, F), lambda i: (0, 0)),    # w1_t
            pl.BlockSpec((1, F), lambda i: (0, 0)),    # b1
            pl.BlockSpec((F, D), lambda i: (0, 0)),    # w2_t
            pl.BlockSpec((1, D), lambda i: (0, 0)),    # b2
            pl.BlockSpec((1, D), lambda i: (0, 0)),    # ln2_g
            pl.BlockSpec((1, D), lambda i: (0, 0)),    # ln2_b
        ],
        out_specs=pl.BlockSpec((TM, D), lambda i: (i, 0)),
        compiler_params=par1,
    )(ctx2, x2, wo_t, params["bo"], params["ln1_g"], params["ln1_b"],
      w1_t, params["b1"], w2_t, params["b2"], params["ln2_g"], params["ln2_b"])

    return out.reshape(B, S, D), attn


def init_params(key, model_dim, ffn_dim):
    ks = jax.random.split(key, 6)
    s = 0.02
    f32 = jnp.float32

    def nrm(k, shape):
        return (s * jax.random.normal(k, shape)).astype(f32)

    return {
        # nn.Linear weights: (out_features, in_features); biases as (1, out).
        "wq": nrm(ks[0], (model_dim, model_dim)), "bq": jnp.zeros((1, model_dim), f32),
        "wk": nrm(ks[1], (model_dim, model_dim)), "bk": jnp.zeros((1, model_dim), f32),
        "wv": nrm(ks[2], (model_dim, model_dim)), "bv": jnp.zeros((1, model_dim), f32),
        "wo": nrm(ks[3], (model_dim, model_dim)), "bo": jnp.zeros((1, model_dim), f32),
        "ln1_g": jnp.ones((1, model_dim), f32), "ln1_b": jnp.zeros((1, model_dim), f32),
        # Conv1d(kernel_size=1) weights squeezed to (out_ch, in_ch).
        "w1": nrm(ks[4], (ffn_dim, model_dim)), "b1": jnp.zeros((1, ffn_dim), f32),
        "w2": nrm(ks[5], (model_dim, ffn_dim)), "b2": jnp.zeros((1, model_dim), f32),
        "ln2_g": jnp.ones((1, model_dim), f32), "ln2_b": jnp.zeros((1, model_dim), f32),
    }


if __name__ == "__main__":
    B, S, D, H, F = 2, 8, 32, 4, 64      # batch, seq, model_dim, heads, ffn_dim
    key = jax.random.PRNGKey(0)
    kx, kp = jax.random.split(key)
    x = jax.random.normal(kx, (B, S, D), dtype=jnp.float32)
    params = init_params(kp, D, F)

    out, attn = jax.jit(functools.partial(encoder_layer, num_heads=H))(x, params)
    jax.block_until_ready((out, attn))

    assert out.shape == (B, S, D)
    assert attn.shape == (B * H, S, S)
    assert bool(jnp.all(jnp.isfinite(out)))
    print("KERNEL_OK")
</pallas_src>

<mosaic_0001>
module attributes {stable_mosaic.version = 11 : i64} {
  func.func @qkv_kernel(%arg0: i32, %arg1: memref<16x32xf32, #tpu.memory_space<vmem>>, %arg2: memref<32x96xf32, #tpu.memory_space<vmem>>, %arg3: memref<1x96xf32, #tpu.memory_space<vmem>>, %arg4: memref<16x96xf32, #tpu.memory_space<vmem>>) attributes {dimension_semantics = [#tpu.dimension_semantics<parallel>], iteration_bounds = array<i64: 1>, scalar_prefetch = 0 : i64, scratch_operands = 0 : i64, tpu.core_type = #tpu.core_type<tc>, window_params = [{transform_indices = @transform_0, window_bounds = array<i64: 16, 32>}, {pipeline_mode = #tpu.pipeline_mode<synchronous>, transform_indices = @transform_1, window_bounds = array<i64: 32, 96>}, {pipeline_mode = #tpu.pipeline_mode<synchronous>, transform_indices = @transform_2, window_bounds = array<i64: 1, 96>}, {transform_indices = @transform_3, window_bounds = array<i64: 16, 96>}]} {
    %c0 = arith.constant 0 : index
    %c0_0 = arith.constant 0 : index
    %0 = vector.load %arg1[%c0, %c0_0] : memref<16x32xf32, #tpu.memory_space<vmem>>, vector<16x32xf32>
    %c0_1 = arith.constant 0 : index
    %c0_2 = arith.constant 0 : index
    %1 = vector.load %arg2[%c0_1, %c0_2] : memref<32x96xf32, #tpu.memory_space<vmem>>, vector<32x96xf32>
    %cst = arith.constant dense<0.000000e+00> : vector<16x96xf32>
    %2 = tpu.matmul %0, %1, %cst {dimension_numbers = #tpu.dot_dimension_numbers<[1], [0], [0], [1], [0, 0, 1, 1], [], []>} : vector<16x32xf32>, vector<32x96xf32>, vector<16x96xf32> -> vector<16x96xf32>
    %c0_3 = arith.constant 0 : index
    %c0_4 = arith.constant 0 : index
    %3 = vector.load %arg3[%c0_3, %c0_4] : memref<1x96xf32, #tpu.memory_space<vmem>>, vector<1x96xf32>
    %4 = vector.broadcast %3 : vector<1x96xf32> to vector<16x96xf32>
    %5 = arith.addf %2, %4 : vector<16x96xf32>
    %c0_5 = arith.constant 0 : index
    %c0_6 = arith.constant 0 : index
    %6 = vector.load %arg4[%c0_5, %c0_6] : memref<16x96xf32, #tpu.memory_space<vmem>>, vector<16x96xf32>
    tpu.vector_store %arg4[%c0_5, %c0_6], %5 {strides = array<i32>} : memref<16x96xf32, #tpu.memory_space<vmem>>, vector<16x96xf32>,
    return
  }
  func.func @transform_0(%arg0: i32) -> (i32, i32) {
    %c0_i32 = arith.constant 0 : i32
    %c0_i32_0 = arith.constant 0 : i32
    return %arg0, %c0_i32 : i32, i32
  }
  func.func @transform_1(%arg0: i32) -> (i32, i32) {
    %c0_i32 = arith.constant 0 : i32
    %c0_i32_0 = arith.constant 0 : i32
    %c0_i32_1 = arith.constant 0 : i32
    return %c0_i32, %c0_i32_0 : i32, i32
  }
  func.func @transform_2(%arg0: i32) -> (i32, i32) {
    %c0_i32 = arith.constant 0 : i32
    %c0_i32_0 = arith.constant 0 : i32
    %c0_i32_1 = arith.constant 0 : i32
    return %c0_i32, %c0_i32_0 : i32, i32
  }
  func.func @transform_3(%arg0: i32) -> (i32, i32) {
    %c0_i32 = arith.constant 0 : i32
    %c0_i32_0 = arith.constant 0 : i32
    return %arg0, %c0_i32 : i32, i32
  }
}

module attributes {stable_mosaic.version = 11 : i64} {
  func.func @sdpa_kernel(%arg0: i32, %arg1: memref<8x8x8xf32, #tpu.memory_space<vmem>>, %arg2: memref<8x8x8xf32, #tpu.memory_space<vmem>>, %arg3: memref<8x8x8xf32, #tpu.memory_space<vmem>>, %arg4: memref<8x8x8xf32, #tpu.memory_space<vmem>>, %arg5: memref<8x8x8xf32, #tpu.memory_space<vmem>>) attributes {dimension_semantics = [#tpu.dimension_semantics<parallel>], iteration_bounds = array<i64: 1>, scalar_prefetch = 0 : i64, scratch_operands = 0 : i64, tpu.core_type = #tpu.core_type<tc>, window_params = [{transform_indices = @transform_0, window_bounds = array<i64: 8, 8, 8>}, {transform_indices = @transform_1, window_bounds = array<i64: 8, 8, 8>}, {transform_indices = @transform_2, window_bounds = array<i64: 8, 8, 8>}, {transform_indices = @transform_3, window_bounds = array<i64: 8, 8, 8>}, {transform_indices = @transform_4, window_bounds = array<i64: 8, 8, 8>}]} {
    %c0 = arith.constant 0 : index
    %c0_0 = arith.constant 0 : index
    %c0_1 = arith.constant 0 : index
    %0 = vector.load %arg1[%c0, %c0_0, %c0_1] : memref<8x8x8xf32, #tpu.memory_space<vmem>>, vector<8x8x8xf32>
    %c0_2 = arith.constant 0 : index
    %c0_3 = arith.constant 0 : index
    %c0_4 = arith.constant 0 : index
    %1 = vector.load %arg2[%c0_2, %c0_3, %c0_4] : memref<8x8x8xf32, #tpu.memory_space<vmem>>, vector<8x8x8xf32>
    %c0_5 = arith.constant 0 : index
    %c0_6 = arith.constant 0 : index
    %c0_7 = arith.constant 0 : index
    %2 = vector.load %arg3[%c0_5, %c0_6, %c0_7] : memref<8x8x8xf32, #tpu.memory_space<vmem>>, vector<8x8x8xf32>
    "tpu.trace_start"() <{level = 10 : i32, message = "gqd,gkd->gqk"}> : () -> ()
    %cst = arith.constant dense<0.000000e+00> : vector<8x8x8xf32>
    %3 = tpu.matmul %0, %1, %cst {dimension_numbers = #tpu.dot_dimension_numbers<[2], [2], [1], [1], [0, 0, 0, 1, 1, 1], [0], [0]>} : vector<8x8x8xf32>, vector<8x8x8xf32>, vector<8x8x8xf32> -> vector<8x8x8xf32>
    "tpu.trace_stop"() : () -> ()
    %cst_8 = arith.constant 0.707106769 : f32
    %4 = vector.broadcast %cst_8 : f32 to vector<8x8x8xf32>
    %5 = arith.mulf %3, %4 : vector<8x8x8xf32>
    %cst_9 = arith.constant dense<0xFF800000> : vector<8x8xf32>
    %6 = vector.multi_reduction <maximumf>, %5, %cst_9 [2] : vector<8x8x8xf32> to vector<8x8xf32>
    %7 = vector.shape_cast %6 : vector<8x8xf32> to vector<8x8x1xf32>
    %8 = vector.broadcast %7 : vector<8x8x1xf32> to vector<8x8x8xf32>
    %9 = arith.subf %5, %8 : vector<8x8x8xf32>
    %10 = math.exp %9 : vector<8x8x8xf32>
    %cst_10 = arith.constant dense<0.000000e+00> : vector<8x8xf32>
    %11 = vector.multi_reduction <add>, %10, %cst_10 [2] : vector<8x8x8xf32> to vector<8x8xf32>
    %12 = vector.shape_cast %11 : vector<8x8xf32> to vector<8x8x1xf32>
    %13 = tpu.reciprocal %12 : vector<8x8x1xf32> -> vector<8x8x1xf32>
    %14 = vector.broadcast %13 : vector<8x8x1xf32> to vector<8x8x8xf32>
    %15 = arith.mulf %10, %14 : vector<8x8x8xf32>
    %c0_11 = arith.constant 0 : index
    %c0_12 = arith.constant 0 : index
    %c0_13 = arith.constant 0 : index
    %16 = vector.load %arg5[%c0_11, %c0_12, %c0_13] : memref<8x8x8xf32, #tpu.memory_space<vmem>>, vector<8x8x8xf32>
    tpu.vector_store %arg5[%c0_11, %c0_12, %c0_13], %15 {strides = array<i32>} : memref<8x8x8xf32, #tpu.memory_space<vmem>>, vector<8x8x8xf32>,
    "tpu.trace_start"() <{level = 10 : i32, message = "gqk,gkd->gqd"}> : () -> ()
    %cst_14 = arith.constant dense<0.000000e+00> : vector<8x8x8xf32>
    %17 = tpu.matmul %15, %2, %cst_14 {dimension_numbers = #tpu.dot_dimension_numbers<[2], [1], [1], [2], [0, 0, 0, 1, 1, 2], [0], [0]>} : vector<8x8x8xf32>, vector<8x8x8xf32>, vector<8x8x8xf32> -> vector<8x8x8xf32>
    "tpu.trace_stop"() : () -> ()
    %c0_15 = arith.constant 0 : index
    %c0_16 = arith.constant 0 : index
    %c0_17 = arith.constant 0 : index
    %18 = vector.load %arg4[%c0_15, %c0_16, %c0_17] : memref<8x8x8xf32, #tpu.memory_space<vmem>>, vector<8x8x8xf32>
    tpu.vector_store %arg4[%c0_15, %c0_16, %c0_17], %17 {strides = array<i32>} : memref<8x8x8xf32, #tpu.memory_space<vmem>>, vector<8x8x8xf32>,
    return
  }
  func.func @transform_0(%arg0: i32) -> (i32, i32, i32) {
    %c0_i32 = arith.constant 0 : i32
    %c0_i32_0 = arith.constant 0 : i32
    %c0_i32_1 = arith.constant 0 : i32
    return %arg0, %c0_i32, %c0_i32_0 : i32, i32, i32
  }
  func.func @transform_1(%arg0: i32) -> (i32, i32, i32) {
    %c0_i32 = arith.constant 0 : i32
    %c0_i32_0 = arith.constant 0 : i32
    %c0_i32_1 = arith.constant 0 : i32
    return %arg0, %c0_i32, %c0_i32_0 : i32, i32, i32
  }
  func.func @transform_2(%arg0: i32) -> (i32, i32, i32) {
    %c0_i32 = arith.constant 0 : i32
    %c0_i32_0 = arith.constant 0 : i32
    %c0_i32_1 = arith.constant 0 : i32
    return %arg0, %c0_i32, %c0_i32_0 : i32, i32, i32
  }
  func.func @transform_3(%arg0: i32) -> (i32, i32, i32) {
    %c0_i32 = arith.constant 0 : i32
    %c0_i32_0 = arith.constant 0 : i32
    %c0_i32_1 = arith.constant 0 : i32
    return %arg0, %c0_i32, %c0_i32_0 : i32, i32, i32
  }
  func.func @transform_4(%arg0: i32) -> (i32, i32, i32) {
    %c0_i32 = arith.constant 0 : i32
    %c0_i32_0 = arith.constant 0 : i32
    %c0_i32_1 = arith.constant 0 : i32
    return %arg0, %c0_i32, %c0_i32_0 : i32, i32, i32
  }
}

module attributes {stable_mosaic.version = 11 : i64} {
  func.func @post_attn_kernel(%arg0: i32, %arg1: memref<16x32xf32, #tpu.memory_space<vmem>>, %arg2: memref<16x32xf32, #tpu.memory_space<vmem>>, %arg3: memref<32x32xf32, #tpu.memory_space<vmem>>, %arg4: memref<1x32xf32, #tpu.memory_space<vmem>>, %arg5: memref<1x32xf32, #tpu.memory_space<vmem>>, %arg6: memref<1x32xf32, #tpu.memory_space<vmem>>, %arg7: memref<32x64xf32, #tpu.memory_space<vmem>>, %arg8: memref<1x64xf32, #tpu.memory_space<vmem>>, %arg9: memref<64x32xf32, #tpu.memory_space<vmem>>, %arg10: memref<1x32xf32, #tpu.memory_space<vmem>>, %arg11: memref<1x32xf32, #tpu.memory_space<vmem>>, %arg12: memref<1x32xf32, #tpu.memory_space<vmem>>, %arg13: memref<16x32xf32, #tpu.memory_space<vmem>>) attributes {dimension_semantics = [#tpu.dimension_semantics<parallel>], iteration_bounds = array<i64: 1>, scalar_prefetch = 0 : i64, scratch_operands = 0 : i64, tpu.core_type = #tpu.core_type<tc>, window_params = [{transform_indices = @transform_0, window_bounds = array<i64: 16, 32>}, {transform_indices = @transform_1, window_bounds = array<i64: 16, 32>}, {pipeline_mode = #tpu.pipeline_mode<synchronous>, transform_indices = @transform_2, window_bounds = array<i64: 32, 32>}, {pipeline_mode = #tpu.pipeline_mode<synchronous>, transform_indices = @transform_3, window_bounds = array<i64: 1, 32>}, {pipeline_mode = #tpu.pipeline_mode<synchronous>, transform_indices = @transform_4, window_bounds = array<i64: 1, 32>}, {pipeline_mode = #tpu.pipeline_mode<synchronous>, transform_indices = @transform_5, window_bounds = array<i64: 1, 32>}, {pipeline_mode = #tpu.pipeline_mode<synchronous>, transform_indices = @transform_6, window_bounds = array<i64: 32, 64>}, {pipeline_mode = #tpu.pipeline_mode<synchronous>, transform_indices = @transform_7, window_bounds = array<i64: 1, 64>}, {pipeline_mode = #tpu.pipeline_mode<synchronous>, transform_indices = @transform_8, window_bounds = array<i64: 64, 32>}, {pipeline_mode = #tpu.pipeline_mode<synchronous>, transform_indices = @transform_9, window_bounds = array<i64: 1, 32>}, {pipeline_mode = #tpu.pipeline_mode<synchronous>, transform_indices = @transform_10, window_bounds = array<i64: 1, 32>}, {pipeline_mode = #tpu.pipeline_mode<synchronous>, transform_indices = @transform_11, window_bounds = array<i64: 1, 32>}, {transform_indices = @transform_12, window_bounds = array<i64: 16, 32>}]} {
    %c0 = arith.constant 0 : index
    %c0_0 = arith.constant 0 : index
    %0 = vector.load %arg1[%c0, %c0_0] : memref<16x32xf32, #tpu.memory_space<vmem>>, vector<16x32xf32>
    %c0_1 = arith.constant 0 : index
    %c0_2 = arith.constant 0 : index
    %1 = vector.load %arg2[%c0_1, %c0_2] : memref<16x32xf32, #tpu.memory_space<vmem>>, vector<16x32xf32>
    %c0_3 = arith.constant 0 : index
    %c0_4 = arith.constant 0 : index
    %2 = vector.load %arg3[%c0_3, %c0_4] : memref<32x32xf32, #tpu.memory_space<vmem>>, vector<32x32xf32>
    %cst = arith.constant dense<0.000000e+00> : vector<16x32xf32>
    %3 = tpu.matmul %0, %2, %cst {dimension_numbers = #tpu.dot_dimension_numbers<[1], [0], [0], [1], [0, 0, 1, 1], [], []>} : vector<16x32xf32>, vector<32x32xf32>, vector<16x32xf32> -> vector<16x32xf32>
    %c0_5 = arith.constant 0 : index
    %c0_6 = arith.constant 0 : index
    %4 = vector.load %arg4[%c0_5, %c0_6] : memref<1x32xf32, #tpu.memory_space<vmem>>, vector<1x32xf32>
    %5 = vector.broadcast %4 : vector<1x32xf32> to vector<16x32xf32>
    %6 = arith.addf %3, %5 : vector<16x32xf32>
    %7 = arith.addf %1, %6 : vector<16x32xf32>
    %c0_7 = arith.constant 0 : index
    %c0_8 = arith.constant 0 : index
    %8 = vector.load %arg5[%c0_7, %c0_8] : memref<1x32xf32, #tpu.memory_space<vmem>>, vector<1x32xf32>
    %c0_9 = arith.constant 0 : index
    %c0_10 = arith.constant 0 : index
    %9 = vector.load %arg6[%c0_9, %c0_10] : memref<1x32xf32, #tpu.memory_space<vmem>>, vector<1x32xf32>
    %cst_11 = arith.constant dense<0.000000e+00> : vector<16xf32>
    %10 = vector.multi_reduction <add>, %7, %cst_11 [1] : vector<16x32xf32> to vector<16xf32>
    %11 = vector.shape_cast %10 : vector<16xf32> to vector<16x1xf32>
    %cst_12 = arith.constant 3.200000e+01 : f32
    %12 = vector.broadcast %cst_12 : f32 to vector<16x1xf32>
    %13 = arith.divf %11, %12 : vector<16x1xf32>
    %14 = vector.broadcast %13 : vector<16x1xf32> to vector<16x32xf32>
    %15 = arith.subf %7, %14 : vector<16x32xf32>
    %16 = arith.mulf %15, %15 : vector<16x32xf32>
    %cst_13 = arith.constant dense<0.000000e+00> : vector<16xf32>
    %17 = vector.multi_reduction <add>, %16, %cst_13 [1] : vector<16x32xf32> to vector<16xf32>
    %18 = vector.shape_cast %17 : vector<16xf32> to vector<16x1xf32>
    %cst_14 = arith.constant 3.200000e+01 : f32
    %19 = vector.broadcast %cst_14 : f32 to vector<16x1xf32>
    %20 = arith.divf %18, %19 : vector<16x1xf32>
    %21 = vector.broadcast %13 : vector<16x1xf32> to vector<16x32xf32>
    %22 = arith.subf %7, %21 : vector<16x32xf32>
    %cst_15 = arith.constant 9.99999974E-6 : f32
    %23 = vector.broadcast %cst_15 : f32 to vector<16x1xf32>
    %24 = arith.addf %20, %23 : vector<16x1xf32>
    %25 = math.rsqrt %24 : vector<16x1xf32>
    %26 = vector.broadcast %25 : vector<16x1xf32> to vector<16x32xf32>
    %27 = arith.mulf %22, %26 : vector<16x32xf32>
    %28 = vector.broadcast %8 : vector<1x32xf32> to vector<16x32xf32>
    %29 = arith.mulf %27, %28 : vector<16x32xf32>
    %30 = vector.broadcast %9 : vector<1x32xf32> to vector<16x32xf32>
    %31 = arith.addf %29, %30 : vector<16x32xf32>
    %c0_16 = arith.constant 0 : index
    %c0_17 = arith.constant 0 : index
    %32 = vector.load %arg7[%c0_16, %c0_17] : memref<32x64xf32, #tpu.memory_space<vmem>>, vector<32x64xf32>
    %cst_18 = arith.constant dense<0.000000e+00> : vector<16x64xf32>
    %33 = tpu.matmul %31, %32, %cst_18 {dimension_numbers = #tpu.dot_dimension_numbers<[1], [0], [0], [1], [0, 0, 1, 1], [], []>} : vector<16x32xf32>, vector<32x64xf32>, vector<16x64xf32> -> vector<16x64xf32>
    %c0_19 = arith.constant 0 : index
    %c0_20 = arith.constant 0 : index
    %34 = vector.load %arg8[%c0_19, %c0_20] : memref<1x64xf32, #tpu.memory_space<vmem>>, vector<1x64xf32>
    %35 = vector.broadcast %34 : vector<1x64xf32> to vector<16x64xf32>
    %36 = arith.addf %33, %35 : vector<16x64xf32>
    %cst_21 = arith.constant 0.000000e+00 : f32
    %37 = vector.broadcast %cst_21 : f32 to vector<16x64xf32>
    %38 = arith.maximumf %36, %37 : vector<16x64xf32>
    %c0_22 = arith.constant 0 : index
    %c0_23 = arith.constant 0 : index
    %39 = vector.load %arg9[%c0_22, %c0_23] : memref<64x32xf32, #tpu.memory_space<vmem>>, vector<64x32xf32>
    %cst_24 = arith.constant dense<0.000000e+00> : vector<16x32xf32>
    %40 = tpu.matmul %38, %39, %cst_24 {dimension_numbers = #tpu.dot_dimension_numbers<[1], [0], [0], [1], [0, 0, 1, 1], [], []>} : vector<16x64xf32>, vector<64x32xf32>, vector<16x32xf32> -> vector<16x32xf32>
    %c0_25 = arith.constant 0 : index
    %c0_26 = arith.constant 0 : index
    %41 = vector.load %arg10[%c0_25, %c0_26] : memref<1x32xf32, #tpu.memory_space<vmem>>, vector<1x32xf32>
    %42 = vector.broadcast %41 : vector<1x32xf32> to vector<16x32xf32>
    %43 = arith.addf %40, %42 : vector<16x32xf32>
    %44 = arith.addf %31, %43 : vector<16x32xf32>
    %c0_27 = arith.constant 0 : index
    %c0_28 = arith.constant 0 : index
    %45 = vector.load %arg11[%c0_27, %c0_28] : memref<1x32xf32, #tpu.memory_space<vmem>>, vector<1x32xf32>
    %c0_29 = arith.constant 0 : index
    %c0_30 = arith.constant 0 : index
    %46 = vector.load %arg12[%c0_29, %c0_30] : memref<1x32xf32, #tpu.memory_space<vmem>>, vector<1x32xf32>
    %cst_31 = arith.constant dense<0.000000e+00> : vector<16xf32>
    %47 = vector.multi_reduction <add>, %44, %cst_31 [1] : vector<16x32xf32> to vector<16xf32>
    %48 = vector.shape_cast %47 : vector<16xf32> to vector<16x1xf32>
    %cst_32 = arith.constant 3.200000e+01 : f32
    %49 = vector.broadcast %cst_32 : f32 to vector<16x1xf32>
    %50 = arith.divf %48, %49 : vector<16x1xf32>
    %51 = vector.broadcast %50 : vector<16x1xf32> to vector<16x32xf32>
    %52 = arith.subf %44, %51 : vector<16x32xf32>
    %53 = arith.mulf %52, %52 : vector<16x32xf32>
    %cst_33 = arith.constant dense<0.000000e+00> : vector<16xf32>
    %54 = vector.multi_reduction <add>, %53, %cst_33 [1] : vector<16x32xf32> to vector<16xf32>
    %55 = vector.shape_cast %54 : vector<16xf32> to vector<16x1xf32>
    %cst_34 = arith.constant 3.200000e+01 : f32
    %56 = vector.broadcast %cst_34 : f32 to vector<16x1xf32>
    %57 = arith.divf %55, %56 : vector<16x1xf32>
    %58 = vector.broadcast %50 : vector<16x1xf32> to vector<16x32xf32>
    %59 = arith.subf %44, %58 : vector<16x32xf32>
    %cst_35 = arith.constant 9.99999974E-6 : f32
    %60 = vector.broadcast %cst_35 : f32 to vector<16x1xf32>
    %61 = arith.addf %57, %60 : vector<16x1xf32>
    %62 = math.rsqrt %61 : vector<16x1xf32>
    %63 = vector.broadcast %62 : vector<16x1xf32> to vector<16x32xf32>
    %64 = arith.mulf %59, %63 : vector<16x32xf32>
    %65 = vector.broadcast %45 : vector<1x32xf32> to vector<16x32xf32>
    %66 = arith.mulf %64, %65 : vector<16x32xf32>
    %67 = vector.broadcast %46 : vector<1x32xf32> to vector<16x32xf32>
    %68 = arith.addf %66, %67 : vector<16x32xf32>
    %c0_36 = arith.constant 0 : index
    %c0_37 = arith.constant 0 : index
    %69 = vector.load %arg13[%c0_36, %c0_37] : memref<16x32xf32, #tpu.memory_space<vmem>>, vector<16x32xf32>
    tpu.vector_store %arg13[%c0_36, %c0_37], %68 {strides = array<i32>} : memref<16x32xf32, #tpu.memory_space<vmem>>, vector<16x32xf32>,
    return
  }
  func.func @transform_0(%arg0: i32) -> (i32, i32) {
    %c0_i32 = arith.constant 0 : i32
    %c0_i32_0 = arith.constant 0 : i32
    return %arg0, %c0_i32 : i32, i32
  }
  func.func @transform_1(%arg0: i32) -> (i32, i32) {
    %c0_i32 = arith.constant 0 : i32
    %c0_i32_0 = arith.constant 0 : i32
    return %arg0, %c0_i32 : i32, i32
  }
  func.func @transform_2(%arg0: i32) -> (i32, i32) {
    %c0_i32 = arith.constant 0 : i32
    %c0_i32_0 = arith.constant 0 : i32
    %c0_i32_1 = arith.constant 0 : i32
    return %c0_i32, %c0_i32_0 : i32, i32
  }
  func.func @transform_3(%arg0: i32) -> (i32, i32) {
    %c0_i32 = arith.constant 0 : i32
    %c0_i32_0 = arith.constant 0 : i32
    %c0_i32_1 = arith.constant 0 : i32
    return %c0_i32, %c0_i32_0 : i32, i32
  }
  func.func @transform_4(%arg0: i32) -> (i32, i32) {
    %c0_i32 = arith.constant 0 : i32
    %c0_i32_0 = arith.constant 0 : i32
    %c0_i32_1 = arith.constant 0 : i32
    return %c0_i32, %c0_i32_0 : i32, i32
  }
  func.func @transform_5(%arg0: i32) -> (i32, i32) {
    %c0_i32 = arith.constant 0 : i32
    %c0_i32_0 = arith.constant 0 : i32
    %c0_i32_1 = arith.constant 0 : i32
    return %c0_i32, %c0_i32_0 : i32, i32
  }
  func.func @transform_6(%arg0: i32) -> (i32, i32) {
    %c0_i32 = arith.constant 0 : i32
    %c0_i32_0 = arith.constant 0 : i32
    %c0_i32_1 = arith.constant 0 : i32
    return %c0_i32, %c0_i32_0 : i32, i32
  }
  func.func @transform_7(%arg0: i32) -> (i32, i32) {
    %c0_i32 = arith.constant 0 : i32
    %c0_i32_0 = arith.constant 0 : i32
    %c0_i32_1 = arith.constant 0 : i32
    return %c0_i32, %c0_i32_0 : i32, i32
  }
  func.func @transform_8(%arg0: i32) -> (i32, i32) {
    %c0_i32 = arith.constant 0 : i32
    %c0_i32_0 = arith.constant 0 : i32
    %c0_i32_1 = arith.constant 0 : i32
    return %c0_i32, %c0_i32_0 : i32, i32
  }
  func.func @transform_9(%arg0: i32) -> (i32, i32) {
    %c0_i32 = arith.constant 0 : i32
    %c0_i32_0 = arith.constant 0 : i32
    %c0_i32_1 = arith.constant 0 : i32
    return %c0_i32, %c0_i32_0 : i32, i32
  }
  func.func @transform_10(%arg0: i32) -> (i32, i32) {
    %c0_i32 = arith.constant 0 : i32
    %c0_i32_0 = arith.constant 0 : i32
    %c0_i32_1 = arith.constant 0 : i32
    return %c0_i32, %c0_i32_0 : i32, i32
  }
  func.func @transform_11(%arg0: i32) -> (i32, i32) {
    %c0_i32 = arith.constant 0 : i32
    %c0_i32_0 = arith.constant 0 : i32
    %c0_i32_1 = arith.constant 0 : i32
    return %c0_i32, %c0_i32_0 : i32, i32
  }
  func.func @transform_12(%arg0: i32) -> (i32, i32) {
    %c0_i32 = arith.constant 0 : i32
    %c0_i32_0 = arith.constant 0 : i32
    return %arg0, %c0_i32 : i32, i32
  }
}

</mosaic_0001>

<bundles_post_ra>
// kernel: encoder_layer.3
= control target key start
LH: loop header
LB: loop body
LE: loop exit
PB: predicated region body
PF: predicated region fallthrough
CT: control target
= control target key end

     0   :  { %vm27_vm0 = vcmask 261120   ;;  %vm109_vm1 = vcmask 785408   ;;  %s191_s1 = inlined_call_operand.vmem [shape: f32[32,96], index: 1, kind: input, shape index: {}]   ;;  %s192_s0 = inlined_call_operand.vmem [shape: f32[16,32], index: 0, kind: input, shape index: {}]   ;;  %s193_s2 = inlined_call_operand.vmem [shape: f32[1,96], index: 2, kind: input, shape index: {}]   ;;  %s194_s3 = inlined_call_operand.vmem [shape: f32[16,96], index: 3, kind: output, shape index: {}]  }
   0x1   :  { %v16_v0 = vld [vmem:[%s191_s1] sm:$0xff]  ;;  %v17_v1 = vld [vmem:[%s191_s1 + $0x8] sm:$0xff]  ;;  %v18_v2 = vld [vmem:[%s191_s1 + $0x10] sm:$0xff] }
   0x2   :  { %v136_v3 = vpack.c.bf16 %v17_v1, %v16_v0  ;;  %v19_v4 = vld [vmem:[%s191_s1 + $0x18] sm:$0xff]  ;;  %v14_v5 = vld [vmem:[%s192_s0] sm:$0xff]  ;;  %v15_v7 = vld [vmem:[%s192_s0 + $0x8] sm:$0xff] }
   0x3   :  { %v140_v6 = vpack.c.bf16 %v19_v4, %v18_v2  ;;  %133 = vmatprep.mubr.msk.f32.mxu0 %vm27_vm0, %v14_v5  ;;  %v116_v8 = vld [vmem:[%s193_s2] ss:$0 sm:$0xff] }
   0x4   :  { %137 = vmatprep.subr.bf16.mxu0 %v136_v3 }
   0x5   :  { %139 = vmatpush3.bf16.msra.mxu0 %v136_v3 }
   0x6   :  { %141 = vmatprep.subr.bf16.mxu0 %v140_v6 }
   0x9   :  { %143 = vmatpush3.bf16.msra.mxu0 %v140_v6 }
   0xc   :  { %134 = vmatmul.mubr.msk.f32.vlgmr.msra.gmra.mrb[0].mxu0 %vm27_vm0, %v15_v7 }
  0xdf   :  { %v135_v9 = vpop.f32.mrb[0].mxu0 }
  0xe0   :  { %v106_v10 = vadd.f32 %v135_v9, %v116_v8  ;;  %v100_v11 = vpop.f32.mrb[1].mxu0 }
  0xe1   :  { %v101_v12 = vadd.f32 %v116_v8, %v100_v11 }
  0xe2   :  { %111 = vst.msk [vmem:[%s194_s3 + $0x8] sm:$0xff] %vm109_vm1, %v106_v10 }
  0xe3   :  { %110 = vst.msk [vmem:[%s194_s3] sm:$0xff] %vm109_vm1, %v101_v12 }

// kernel: encoder_layer.5
= control target key start
LH: loop header
LB: loop body
LE: loop exit
PB: predicated region body
PF: predicated region fallthrough
CT: control target
= control target key end

     0   :  { %vm57_vm0 = vcmask 261120   ;;  %s759_s0 = inlined_call_operand.vmem [shape: f32[16,32], index: 0, kind: input, shape index: {}]   ;;  %s760_s1 = inlined_call_operand.vmem [shape: f32[16,32], index: 1, kind: input, shape index: {}]   ;;  %s761_s2 = inlined_call_operand.vmem [shape: f32[32,32], index: 2, kind: input, shape index: {}]   ;;  %s762_s3 = inlined_call_operand.vmem [shape: f32[1,32], index: 3, kind: input, shape index: {}]   ;;  %s763_s4 = inlined_call_operand.vmem [shape: f32[1,32], index: 4, kind: input, shape index: {}]   ;;  %s764_s5 = inlined_call_operand.vmem [shape: f32[1,32], index: 5, kind: input, shape index: {}]   ;;  %s765_s6 = inlined_call_operand.vmem [shape: f32[32,64], index: 6, kind: input, shape index: {}]   ;;  %s766_s7 = inlined_call_operand.vmem [shape: f32[1,64], index: 7, kind: input, shape index: {}]   ;;  %s767_s8 = inlined_call_operand.vmem [shape: f32[64,32], index: 8, kind: input, shape index: {}]   ;;  %s768_s9 = inlined_call_operand.vmem [shape: f32[1,32], index: 9, kind: input, shape index: {}]   ;;  %s769_s10 = inlined_call_operand.vmem [shape: f32[1,32], index: 10, kind: input, shape index: {}]   ;;  %s770_s11 = inlined_call_operand.vmem [shape: f32[1,32], index: 11, kind: input, shape index: {}]   ;;  %s771_s12 = inlined_call_operand.hbm [shape: f32[16,32], index: 12, kind: output, shape index: {}]  }
   0x1   :  { %v46_v0 = vld [vmem:[%s761_s2] sm:$0xff]  ;;  %v47_v1 = vld [vmem:[%s761_s2 + $0x8] sm:$0xff]  ;;  %v48_v2 = vld [vmem:[%s761_s2 + $0x10] sm:$0xff] }
   0x2   :  { %v517_v3 = vpack.c.bf16 %v47_v1, %v46_v0  ;;  %v49_v4 = vld [vmem:[%s761_s2 + $0x18] sm:$0xff]  ;;  %v42_v5 = vld [vmem:[%s759_s0] sm:$0xff] }
   0x3   :  { %v521_v6 = vpack.c.bf16 %v49_v4, %v48_v2  ;;  %484 = vmatprep.mubr.msk.f32.mxu1 %vm57_vm0, %v42_v5 }
   0x4   :  { %17 = vsyncpa [#allocation3], 0  ;;  %518 = vmatprep.subr.bf16.mxu1 %v517_v3  ;;  %v43_v7 = vld [vmem:[%s759_s0 + $0x8] sm:$0xff]  ;;  %v441_v8 = vld [vmem:[%s762_s3] ss:$0 sm:$0xff]  ;;  %vm295_vm1 = vcmask 523264  }
   0x5   :  { %520 = vmatpush3.bf16.msra.mxu1 %v517_v3  ;;  %v44_v11 = vld [vmem:[%s760_s1] sm:$0xff]  ;;  %v45_v14 = vld [vmem:[%s760_s1 + $0x8] sm:$0xff]  ;;  %v188_v32 = vld [vmem:[%s765_s6 + $0x10] sm:$0xff]  ;;  %s584_s25 = smov [#allocation2]  }
   0x6   :  { %522 = vmatprep.subr.bf16.mxu1 %v521_v6  ;;  %v186_v29 = vld [vmem:[%s765_s6] sm:$0xff]  ;;  %v187_v30 = vld [vmem:[%s765_s6 + $0x8] sm:$0xff]  ;;  %v189_v33 = vld [vmem:[%s765_s6 + $0x18] sm:$0xff]  ;;  %s430_s26 = sshll.u32 %s584_s25, 4  ;;  %s431_s26 = int_to_ptr.vmem [resolvable:$true] %s430_s26 }
   0x7   :  { %v525_v31 = vpack.c.bf16 %v187_v30, %v186_v29  ;;  %v529_v34 = vpack.c.bf16 %v189_v33, %v188_v32  ;;  %v280_v35 = vld [vmem:[%s767_s8] sm:$0xff]  ;;  %v281_v36 = vld [vmem:[%s767_s8 + $0x8] sm:$0xff]  ;;  %v282_v37 = vld [vmem:[%s767_s8 + $0x10] sm:$0xff]  ;;  %s560_s27 = scalar_lea.vmem %s431_s26, 256  ;;  %p565_p1 = scmp.lt.s32.totalorder %s431_s26, %s431_s26 }
   0x8   :  { %v533_v38 = vpack.c.bf16 %v281_v36, %v280_v35  ;;  %v283_v39 = vld [vmem:[%s767_s8 + $0x18] sm:$0xff]  ;;  %v284_v41 = vld [vmem:[%s767_s8 + $0x20] sm:$0xff]  ;;  %v285_v42 = vld [vmem:[%s767_s8 + $0x28] sm:$0xff]  ;;  %p561_p0 = scmp.ne.s32.totalorder %s431_s26, %s560_s27  ;;  %p566_p2 = scmp.lt.s32.totalorder %s560_s27, %s560_s27 }
   0x9   :  { %524 = vmatpush3.bf16.msra.mxu1 %v521_v6  ;;  %v537_v40 = vpack.c.bf16 %v283_v39, %v282_v37  ;;  %v541_v43 = vpack.c.bf16 %v285_v42, %v284_v41  ;;  %v444_v51 = vld [vmem:[%s763_s4] ss:$0 sm:$0xff]  ;;  %v286_v60 = vld [vmem:[%s767_s8 + $0x30] sm:$0xff]  ;;  %v287_v61 = vld [vmem:[%s767_s8 + $0x38] sm:$0xff] }
   0xa   :  { %526 = vmatprep.subr.bf16.mxu1 %v525_v31  ;;  %534 = vmatprep.subr.bf16.mxu0 %v533_v38  ;;  %v445_v53 = vld [vmem:[%s764_s5] ss:$0 sm:$0xff]  ;;  %v545_v62 = vpack.c.bf16 %v287_v61, %v286_v60  ;;  %p567_p3 = por %p566_p2, %p565_p1 }
   0xb   :  { %536 = vmatpush3.bf16.msra.mxu0 %v533_v38  ;;  %v446_v63 = vld [vmem:[%s766_s7] ss:$0 sm:$0xff] }
   0xc   :  { %485 = vmatmul.mubr.msk.f32.vlgmr.msra.gmra.mrb[0].mxu1 %vm57_vm0, %v43_v7  ;;  %538 = vmatprep.subr.bf16.mxu0 %v537_v40  ;;  %v449_v6 = vld [vmem:[%s768_s9] ss:$0 sm:$0xff]  ;;  %p568_p4 = pnand %p567_p3, %p561_p0 }
   0xd   :  { %528 = vmatpush3.bf16.msra.mxu1 %v525_v31  ;;  %v452_v32 = vld [vmem:[%s769_s10] ss:$0 sm:$0xff] }
   0xe   :  { %530 = vmatprep.subr.bf16.mxu1 %v529_v34  ;;  %v453_v36 = vld [vmem:[%s770_s11] ss:$0 sm:$0xff] }
   0xf   :  { %540 = vmatpush3.bf16.msra.mxu0 %v537_v40 }
  0x10   :  { %542 = vmatprep.subr.bf16.mxu0 %v541_v43 }
  0x11   :  { %532 = vmatpush3.bf16.msra.mxu1 %v529_v34 }
  0x13   :  { %544 = vmatpush3.bf16.msra.mxu0 %v541_v43 }
  0x14   :  { %546 = vmatprep.subr.bf16.mxu0 %v545_v62 }
  0x17   :  { %548 = vmatpush3.bf16.msra.mxu0 %v545_v62 }
  0xdf   :  { %v486_v9 = vpop.f32.mrb[0].mxu1 }
  0xe0   :  { %v130_v10 = vpop.f32.mrb[1].mxu1  ;;  %v136_v12 = vadd.f32 %v486_v9, %v441_v8 }
  0xe1   :  { %v131_v13 = vadd.f32 %v441_v8, %v130_v10 }
  0xe2   :  { %v140_v17 = vadd.f32 %v136_v12, %v45_v14 }
  0xe3   :  { %v139_v15 = vadd.f32 %v131_v13, %v44_v11 }
  0xe4   :  { %v146_v18 = vsel %vm57_vm0, %v140_v17, 0.0 }
  0xe5   :  { %v143_v16 = vsel %vm57_vm0, %v139_v15, 0.0 }
  0xe6   :  { %144 = vadd.xlane.f32.xlu0 %v143_v16 }
  0xea   :  { %147 = vadd.xlane.f32.xlu0 %v146_v18 }
 0x173   :  { %v145_v19 = vpop.xlane.xlu0 %144 }
 0x174   :  { %v150_v20 = vmul.f32 0.03125, %v145_v19 }
 0x176   :  { %v152_v21 = vsub.f32 %v139_v15, %v150_v20 }
 0x177   :  { %v148_v22 = vpop.xlane.xlu0 %147 }
 0x178   :  { %v151_v23 = vmul.f32 0.03125, %v148_v22  ;;  %v154_v24 = vmul.f32 %v152_v21, %v152_v21 }
 0x17a   :  { %v153_v25 = vsub.f32 %v140_v17, %v151_v23  ;;  %v156_v26 = vsel %vm57_vm0, %v154_v24, 0.0 }
 0x17b   :  { %157 = vadd.xlane.f32.xlu1 %v156_v26 }
 0x17c   :  { %v155_v27 = vmul.f32 %v153_v25, %v153_v25 }
 0x17e   :  { %v159_v28 = vsel %vm57_vm0, %v155_v27, 0.0 }
 0x17f   :  { %160 = vadd.xlane.f32.xlu1 %v159_v28 }
 0x208   :  { %v158_v44 = vpop.xlane.xlu1 %157 }
 0x209   :  { %v162_v45 = vmul.f32 0.03125, %v158_v44 }
 0x20b   :  { %v164_v46 = vadd.f32 1e-05, %v162_v45 }
 0x20c   :  { %v161_v47 = vpop.xlane.xlu1 %160 }
 0x20d   :  { %552 = vrsqrt.f32 %v164_v46  ;;  %v163_v48 = vmul.f32 0.03125, %v161_v47 }
 0x20f   :  { %v165_v49 = vadd.f32 1e-05, %v163_v48 }
 0x211   :  { %554 = vrsqrt.f32 %v165_v49 }
 0x217   :  { %v553_v50 = vpop.eup %552 }
 0x218   :  { %v168_v52 = vmul.f32 %v553_v50, %v152_v21 }
 0x21a   :  { %v176_v54 = vmul.f32 %v444_v51, %v168_v52 }
 0x21b   :  { %v555_v55 = vpop.eup %554 }
 0x21c   :  { %v169_v56 = vmul.f32 %v555_v55, %v153_v25  ;;  %v184_v57 = vadd.f32 %v445_v53, %v176_v54 }
 0x21e   :  { %v177_v58 = vmul.f32 %v444_v51, %v169_v56  ;;  %495 = vmatprep.mubr.msk.f32.mxu1 %vm57_vm0, %v184_v57 }
 0x220   :  { %v185_v59 = vadd.f32 %v445_v53, %v177_v58 }
 0x222   :  { %496 = vmatmul.mubr.msk.f32.vlgmr.msra.gmra.mrb[2].mxu1 %vm57_vm0, %v185_v59 }
 0x2f5   :  { %v497_v0 = vpop.f32.mrb[2].mxu1 }
 0x2f6   :  { %v275_v1 = vadd.f32 %v497_v0, %v446_v63  ;;  %v269_v2 = vpop.f32.mrb[3].mxu1 }
 0x2f7   :  { %v270_v3 = vadd.f32 %v446_v63, %v269_v2 }
 0x2f8   :  { %v279_v5 = vmax.f32 %v275_v1, 0.0 }
 0x2f9   :  { %v278_v4 = vmax.f32 %v270_v3, 0.0 }
 0x2fb   :  { %514 = vmatprep.mubr.msk.f32.mxu0 %vm295_vm1, %v278_v4 }
 0x2fc   :  { %515 = vmatmul.mubr.msk.f32.vlgmr.msra.gmra.mrb[0].mxu0 %vm295_vm1, %v279_v5 }
 0x3cf   :  { %v516_v7 = vpop.f32.mrb[0].mxu0 }
 0x3d0   :  { %v374_v8 = vadd.f32 %v516_v7, %v449_v6  ;;  %v368_v9 = vpop.f32.mrb[1].mxu0 }
 0x3d1   :  { %v369_v10 = vadd.f32 %v449_v6, %v368_v9 }
 0x3d2   :  { %v378_v11 = vadd.f32 %v374_v8, %v185_v59 }
 0x3d3   :  { %v377_v12 = vadd.f32 %v369_v10, %v184_v57 }
 0x3d4   :  { %v384_v13 = vsel %vm57_vm0, %v378_v11, 0.0 }
 0x3d5   :  { %385 = vadd.xlane.f32.xlu1 %v384_v13  ;;  %v381_v14 = vsel %vm57_vm0, %v377_v12, 0.0 }
 0x3d6   :  { %382 = vadd.xlane.f32.xlu0 %v381_v14 }
 0x462   :  { %v386_v15 = vpop.xlane.xlu1 %385 }
 0x463   :  { %v388_v16 = vmul.f32 0.03125, %v386_v15  ;;  %v383_v17 = vpop.xlane.xlu0 %382 }
 0x464   :  { %v387_v18 = vmul.f32 0.03125, %v383_v17 }
 0x465   :  { %v390_v19 = vsub.f32 %v378_v11, %v388_v16 }
 0x466   :  { %v389_v20 = vsub.f32 %v377_v12, %v387_v18 }
 0x467   :  { %v392_v21 = vmul.f32 %v390_v19, %v390_v19 }
 0x468   :  { %v391_v22 = vmul.f32 %v389_v20, %v389_v20 }
 0x469   :  { %v396_v23 = vsel %vm57_vm0, %v392_v21, 0.0 }
 0x46a   :  { %397 = vadd.xlane.f32.xlu1 %v396_v23  ;;  %v393_v24 = vsel %vm57_vm0, %v391_v22, 0.0 }
 0x46b   :  { %394 = vadd.xlane.f32.xlu0 %v393_v24 }
 0x4f7   :  { %v398_v25 = vpop.xlane.xlu1 %397 }
 0x4f8   :  { %v400_v26 = vmul.f32 0.03125, %v398_v25  ;;  %v395_v27 = vpop.xlane.xlu0 %394 }
 0x4f9   :  { %v399_v28 = vmul.f32 0.03125, %v395_v27 }
 0x4fa   :  { %v402_v29 = vadd.f32 1e-05, %v400_v26 }
 0x4fb   :  { %v401_v30 = vadd.f32 1e-05, %v399_v28 }
 0x4fc   :  { %556 = vrsqrt.f32 %v402_v29 }
 0x4fd   :  { %558 = vrsqrt.f32 %v401_v30 }
 0x506   :  { %v557_v31 = vpop.eup %556 }
 0x507   :  { %v559_v33 = vpop.eup %558  ;;  %v406_v34 = vmul.f32 %v557_v31, %v390_v19 }
 0x508   :  { %v405_v35 = vmul.f32 %v559_v33, %v389_v20 }
 0x509   :  { %v414_v37 = vmul.f32 %v452_v32, %v406_v34 }
 0x50a   :  { %v413_v38 = vmul.f32 %v452_v32, %v405_v35 }
 0x50b   :  { %v422_v39 = vadd.f32 %v453_v36, %v414_v37 }
 0x50c   :  { %v421_v40 = vadd.f32 %v453_v36, %v413_v38 }
 0x50d   :  { %424 = vst.msk [vmem:[#allocation2 + $0x8] sm:$0xff] %vm57_vm0, %v422_v39 }
 0x50e   :  { %423 = vst.msk [vmem:[#allocation2] sm:$0xff] %vm57_vm0, %v421_v40 }
 0x50f   :  { %571 = shalt.err (!%p568_p4)
}
 0x510   :  { %s572_s28 = scalar_lea.hbm %s771_s12, 256 }
 0x511   :  { %p573_p5 = scmp.ne.s32.totalorder %s771_s12, %s572_s28  ;;  %p576_p6 = scmp.lt.u32.totalorder %s572_s28, %s771_s12 }
 0x513   :  { %p578_p7 = pnand %p576_p6, %p573_p5 }
 0x515   :  { %581 = shalt.err (!%p578_p7)
}
 0x516   :  { %s585_s6 = smov 128   ;;  %s586_s15 = smov 8  }
 0x517   :  { %436 = dma.vmem_to_hbm [thread:$0]  %s431_s26, 256, %s771_s12, [#allocation3], %s585_s6, %s585_s6, %s586_s15  }
 0x518   :  { %582 = dma.done.wait [#allocation3], 256  }
 0x519   :  { %583 = vsyncadd [#allocation3], 4294967040 }
 0x51a   :  { %440 = vsyncpa [#allocation3], 1 }

// kernel: encoder_layer.4
= control target key start
LH: loop header
LB: loop body
LE: loop exit
PB: predicated region body
PF: predicated region fallthrough
CT: control target
= control target key end

     0   :  { %vm41_vm0 = vcmask 64512   ;;  %v1563_v2 = vmov 0.0   ;;  %vm1564_vm1 = vmmov 0   ;;  %s1817_s0 = inlined_call_operand.vmem [shape: f32[8,8,8], index: 0, kind: input, shape index: {}]   ;;  %s1818_s1 = inlined_call_operand.vmem [shape: f32[8,8,8], index: 1, kind: input, shape index: {}]   ;;  %s1819_s2 = inlined_call_operand.vmem [shape: f32[8,8,8], index: 2, kind: input, shape index: {}]   ;;  %s1820_s3 = inlined_call_operand.vmem [shape: f32[8,8,8], index: 3, kind: output, shape index: {0}]   ;;  %s1821_s4 = inlined_call_operand.hbm [shape: f32[8,8,8], index: 4, kind: output, shape index: {1}]  }
   0x1   :  { %v25_v0 = vld [vmem:[%s1818_s1] sm:$0xff]  ;;  %v26_v1 = vld [vmem:[%s1818_s1 + $0x8] sm:$0xff]  ;;  %1422 = vmatprep.subr.mxu0 %v1563_v2  ;;  %1424 = vmatprep.mubr.msk.f32.mxu0 %vm1564_vm1, %v1563_v2  ;;  %v27_v4 = vld [vmem:[%s1818_s1 + $0x10] sm:$0xff] }
   0x2   :  { %1423 = vmatpush3.xpose.msk.msra.mxu0 %vm41_vm0, %v25_v0  ;;  %v17_v3 = vld [vmem:[%s1817_s0] sm:$0xff]  ;;  %1427 = vmatprep.subr.mxu1 %v1563_v2  ;;  %v18_v5 = vld [vmem:[%s1817_s0 + $0x8] sm:$0xff]  ;;  %v28_v6 = vld [vmem:[%s1818_s1 + $0x18] sm:$0xff] }
   0x3   :  { %1432 = vmatprep.subr.mxu0 %v1563_v2  ;;  %1428 = vmatpush3.xpose.msk.msra.mxu1 %vm41_vm0, %v26_v1 }
   0x4   :  { %1429 = vmatprep.mubr.msk.f32.mxu1 %vm1564_vm1, %v1563_v2  ;;  %1437 = vmatprep.subr.mxu1 %v1563_v2 }
   0x5   :  { %1425 = vmatmul.mubr.msk.f32.vlgmr.msra.gmra.mrb[0].mxu0 %vm41_vm0, %v17_v3 }
   0x6   :  { %10 = vsyncpa [#allocation3], 0  ;;  %1433 = vmatpush3.xpose.msk.msra.mxu0 %vm41_vm0, %v27_v4  ;;  %1434 = vmatprep.mubr.msk.f32.mxu0 %vm1564_vm1, %v1563_v2  ;;  %v19_v7 = vld [vmem:[%s1817_s0 + $0x10] sm:$0xff]  ;;  %v29_v8 = vld [vmem:[%s1818_s1 + $0x20] sm:$0xff] }
   0x7   :  { %1430 = vmatmul.mubr.msk.f32.vlgmr.msra.gmra.mrb[0].mxu1 %vm41_vm0, %v18_v5  ;;  %1442 = vmatprep.subr.mxu0 %v1563_v2  ;;  %v20_v9 = vld [vmem:[%s1817_s0 + $0x18] sm:$0xff]  ;;  %v30_v10 = vld [vmem:[%s1818_s1 + $0x28] sm:$0xff]  ;;  %v21_v11 = vld [vmem:[%s1817_s0 + $0x20] sm:$0xff] }
   0x8   :  { %1438 = vmatpush3.xpose.msk.msra.mxu1 %vm41_vm0, %v28_v6  ;;  %1439 = vmatprep.mubr.msk.f32.mxu1 %vm1564_vm1, %v1563_v2  ;;  %v31_v12 = vld [vmem:[%s1818_s1 + $0x30] sm:$0xff]  ;;  %v22_v13 = vld [vmem:[%s1817_s0 + $0x28] sm:$0xff]  ;;  %v32_v14 = vld [vmem:[%s1818_s1 + $0x38] sm:$0xff] }
   0x9   :  { %1435 = vmatmul.mubr.msk.f32.vlgmr.msra.gmra.mrb[2].mxu0 %vm41_vm0, %v19_v7  ;;  %1447 = vmatprep.subr.mxu1 %v1563_v2  ;;  %v23_v15 = vld [vmem:[%s1817_s0 + $0x30] sm:$0xff]  ;;  %v24_v16 = vld [vmem:[%s1817_s0 + $0x38] sm:$0xff] }
   0xa   :  { %1443 = vmatpush3.xpose.msk.msra.mxu0 %vm41_vm0, %v29_v8  ;;  %1444 = vmatprep.mubr.msk.f32.mxu0 %vm1564_vm1, %v1563_v2 }
   0xb   :  { %1440 = vmatmul.mubr.msk.f32.vlgmr.msra.gmra.mrb[2].mxu1 %vm41_vm0, %v20_v9  ;;  %1452 = vmatprep.subr.mxu0 %v1563_v2 }
   0xc   :  { %1448 = vmatpush3.xpose.msk.msra.mxu1 %vm41_vm0, %v30_v10  ;;  %1449 = vmatprep.mubr.msk.f32.mxu1 %vm1564_vm1, %v1563_v2 }
   0xd   :  { %1445 = vmatmul.mubr.msk.f32.vlgmr.msra.gmra.mrb[4].mxu0 %vm41_vm0, %v21_v11  ;;  %1457 = vmatprep.subr.mxu1 %v1563_v2 }
   0xe   :  { %1453 = vmatpush3.xpose.msk.msra.mxu0 %vm41_vm0, %v31_v12  ;;  %1454 = vmatprep.mubr.msk.f32.mxu0 %vm1564_vm1, %v1563_v2 }
   0xf   :  { %1450 = vmatmul.mubr.msk.f32.vlgmr.msra.gmra.mrb[4].mxu1 %vm41_vm0, %v22_v13  ;;  %1462 = vmatprep.subr.mxu0 %v1563_v2 }
  0x10   :  { %1458 = vmatpush3.xpose.msk.msra.mxu1 %vm41_vm0, %v32_v14  ;;  %1459 = vmatprep.mubr.msk.f32.mxu1 %vm1564_vm1, %v1563_v2 }
  0x11   :  { %1455 = vmatmul.mubr.msk.f32.vlgmr.msra.gmra.mrb[6].mxu0 %vm41_vm0, %v23_v15  ;;  %1467 = vmatprep.subr.mxu1 %v1563_v2 }
  0x12   :  { %1464 = vmatprep.mubr.msk.f32.mxu0 %vm1564_vm1, %v1563_v2 }
  0x13   :  { %1460 = vmatmul.mubr.msk.f32.vlgmr.msra.gmra.mrb[6].mxu1 %vm41_vm0, %v24_v16 }
  0x14   :  { %1469 = vmatprep.mubr.msk.f32.mxu1 %vm1564_vm1, %v1563_v2 }
  0xd8   :  { %v114_v17 = vpop.f32.mrb[0].mxu0 }
  0xd9   :  { %v650_v18 = vmul.f32 0.70710677, %v114_v17  ;;  %v1426_v19 = vpop.f32.mrb[1].mxu0 }
  0xda   :  { %v190_v20 = vpop.f32.mrb[0].mxu1 }
  0xdb   :  { %v651_v21 = vmul.f32 0.70710677, %v190_v20  ;;  %v658_v22 = vsel %vm41_vm0, %v650_v18, -inf  ;;  %v1431_v23 = vpop.f32.mrb[1].mxu1 }
  0xdc   :  { %659 = vmax.xlane.f32.xlu0 %v658_v22  ;;  %v266_v24 = vpop.f32.mrb[2].mxu0 }
  0xdd   :  { %v652_v25 = vmul.f32 0.70710677, %v266_v24  ;;  %v1436_v26 = vpop.f32.mrb[3].mxu0  ;;  %v661_v27 = vsel %vm41_vm0, %v651_v21, -inf }
  0xde   :  { %v342_v28 = vpop.f32.mrb[2].mxu1  ;;  %v33_v26 = vld [vmem:[%s1819_s2] sm:$0xff] }
  0xdf   :  { %v653_v29 = vmul.f32 0.70710677, %v342_v28  ;;  %v664_v30 = vsel %vm41_vm0, %v652_v25, -inf  ;;  %v1441_v31 = vpop.f32.mrb[3].mxu1  ;;  %1463 = vmatpush3.msra.mxu0 %v33_v26 }
  0xe0   :  { %662 = vmax.xlane.f32.xlu0 %v661_v27  ;;  %665 = vmax.xlane.f32.xlu1 %v664_v30  ;;  %v418_v32 = vpop.f32.mrb[4].mxu0  ;;  %v34_v27 = vld [vmem:[%s1819_s2 + $0x8] sm:$0xff] }
  0xe1   :  { %v654_v33 = vmul.f32 0.70710677, %v418_v32  ;;  %v1446_v34 = vpop.f32.mrb[5].mxu0  ;;  %v667_v35 = vsel %vm41_vm0, %v653_v29, -inf  ;;  %1472 = vmatprep.subr.mxu0 %v1563_v2  ;;  %1468 = vmatpush3.msra.mxu1 %v34_v27 }
  0xe2   :  { %v494_v36 = vpop.f32.mrb[4].mxu1  ;;  %1477 = vmatprep.subr.mxu1 %v1563_v2 }
  0xe3   :  { %v655_v37 = vmul.f32 0.70710677, %v494_v36  ;;  %v670_v38 = vsel %vm41_vm0, %v654_v33, -inf  ;;  %v1451_v39 = vpop.f32.mrb[5].mxu1  ;;  %v35_v36 = vld [vmem:[%s1819_s2 + $0x10] sm:$0xff] }
  0xe4   :  { %668 = vmax.xlane.f32.xlu1 %v667_v35  ;;  %671 = vmax.xlane.f32.xlu0 %v670_v38  ;;  %v570_v40 = vpop.f32.mrb[6].mxu0 }
  0xe5   :  { %v656_v41 = vmul.f32 0.70710677, %v570_v40  ;;  %v673_v42 = vsel %vm41_vm0, %v655_v37, -inf  ;;  %v1456_v43 = vpop.f32.mrb[7].mxu0 }
  0xe6   :  { %v646_v44 = vpop.f32.mrb[6].mxu1 }
  0xe7   :  { %v657_v45 = vmul.f32 0.70710677, %v646_v44  ;;  %v676_v46 = vsel %vm41_vm0, %v656_v41, -inf  ;;  %v1461_v47 = vpop.f32.mrb[7].mxu1  ;;  %v37_v44 = vld [vmem:[%s1819_s2 + $0x20] sm:$0xff] }
  0xe8   :  { %674 = vmax.xlane.f32.xlu1 %v673_v42  ;;  %677 = vmax.xlane.f32.xlu0 %v676_v46  ;;  %v36_v42 = vld [vmem:[%s1819_s2 + $0x18] sm:$0xff] }
  0xe9   :  { %v679_v48 = vsel %vm41_vm0, %v657_v45, -inf }
  0xec   :  { %680 = vmax.xlane.f32.xlu1 %v679_v48  ;;  %v38_v48 = vld [vmem:[%s1819_s2 + $0x28] sm:$0xff] }
 0x169   :  { %v660_v49 = vpop.xlane.xlu0 %659 }
 0x16a   :  { %v682_v50 = vsub.f32 %v650_v18, %v660_v49 }
 0x16c   :  { %v690_v51 = vmul.f32 1.442695, %v682_v50  ;;  %v39_v50 = vld [vmem:[%s1819_s2 + $0x30] sm:$0xff] }
 0x16d   :  { %v663_v52 = vpop.xlane.xlu0 %662  ;;  %v666_v53 = vpop.xlane.xlu1 %665 }
 0x16e   :  { %1507 = vpow2.f32 %v690_v51  ;;  %v683_v54 = vsub.f32 %v651_v21, %v663_v52  ;;  %v684_v55 = vsub.f32 %v652_v25, %v666_v53 }
 0x170   :  { %v692_v56 = vmul.f32 1.442695, %v683_v54  ;;  %v694_v57 = vmul.f32 1.442695, %v684_v55  ;;  %v40_v54 = vld [vmem:[%s1819_s2 + $0x38] sm:$0xff]  ;;  %s1565_s2 = smov [#allocation2]  }
 0x171   :  { %v669_v58 = vpop.xlane.xlu1 %668  ;;  %v672_v59 = vpop.xlane.xlu0 %671  ;;  %s1353_s9 = sshll.u32 %s1565_s2, 4  ;;  %s1354_s9 = int_to_ptr.vmem [resolvable:$true] %s1353_s9 }
 0x172   :  { %1509 = vpow2.f32 %v692_v56  ;;  %v685_v60 = vsub.f32 %v653_v29, %v669_v58  ;;  %v686_v61 = vsub.f32 %v654_v33, %v672_v59  ;;  %s1539_s10 = scalar_lea.vmem %s1354_s9, 1024  ;;  %p1544_p1 = scmp.lt.s32.totalorder %s1354_s9, %s1354_s9 }
 0x173   :  { %1511 = vpow2.f32 %v694_v57  ;;  %p1540_p0 = scmp.ne.s32.totalorder %s1354_s9, %s1539_s10  ;;  %p1545_p2 = scmp.lt.s32.totalorder %s1539_s10, %s1539_s10 }
 0x174   :  { %v696_v62 = vmul.f32 1.442695, %v685_v60  ;;  %v698_v63 = vmul.f32 1.442695, %v686_v61 }
 0x175   :  { %v675_v0 = vpop.xlane.xlu1 %674  ;;  %v678_v1 = vpop.xlane.xlu0 %677  ;;  %p1546_p3 = por %p1545_p2, %p1544_p1 }
 0x176   :  { %1513 = vpow2.f32 %v696_v62  ;;  %v687_v3 = vsub.f32 %v655_v37, %v675_v0  ;;  %v688_v4 = vsub.f32 %v656_v41, %v678_v1 }
 0x177   :  { %1515 = vpow2.f32 %v698_v63  ;;  %p1547_p4 = pnand %p1546_p3, %p1540_p0 }
 0x178   :  { %v1508_v5 = vpop.eup %1507  ;;  %v700_v6 = vmul.f32 1.442695, %v687_v3  ;;  %v702_v7 = vmul.f32 1.442695, %v688_v4 }
 0x179   :  { %v681_v8 = vpop.xlane.xlu1 %680  ;;  %v706_v9 = vsel %vm41_vm0, %v1508_v5, 0.0 }
 0x17a   :  { %1517 = vpow2.f32 %v700_v6  ;;  %v689_v10 = vsub.f32 %v657_v45, %v681_v8  ;;  %707 = vadd.xlane.f32.xlu0 %v706_v9 }
 0x17b   :  { %1519 = vpow2.f32 %v702_v7 }
 0x17c   :  { %v1510_v11 = vpop.eup %1509  ;;  %v704_v12 = vmul.f32 1.442695, %v689_v10 }
 0x17d   :  { %v1512_v13 = vpop.eup %1511  ;;  %v709_v14 = vsel %vm41_vm0, %v1510_v11, 0.0 }
 0x17e   :  { %1521 = vpow2.f32 %v704_v12  ;;  %710 = vadd.xlane.f32.xlu1 %v709_v14  ;;  %v712_v15 = vsel %vm41_vm0, %v1512_v13, 0.0 }
 0x17f   :  { %713 = vadd.xlane.f32.xlu0 %v712_v15 }
 0x180   :  { %v1514_v16 = vpop.eup %1513 }
 0x181   :  { %v1516_v17 = vpop.eup %1515  ;;  %v715_v18 = vsel %vm41_vm0, %v1514_v16, 0.0 }
 0x182   :  { %716 = vadd.xlane.f32.xlu1 %v715_v18  ;;  %v718_v19 = vsel %vm41_vm0, %v1516_v17, 0.0 }
 0x183   :  { %719 = vadd.xlane.f32.xlu0 %v718_v19 }
 0x184   :  { %v1700_v20 = vpop.eup %1517 }
 0x185   :  { %v1702_v21 = vpop.eup %1519  ;;  %v721_v22 = vsel %vm41_vm0, %v1700_v20, 0.0 }
 0x186   :  { %722 = vadd.xlane.f32.xlu1 %v721_v22  ;;  %v724_v23 = vsel %vm41_vm0, %v1702_v21, 0.0 }
 0x187   :  { %725 = vadd.xlane.f32.xlu0 %v724_v23 }
 0x188   :  { %v1708_v24 = vpop.eup %1521 }
 0x189   :  { %v727_v25 = vsel %vm41_vm0, %v1708_v24, 0.0 }
 0x18a   :  { %728 = vadd.xlane.f32.xlu1 %v727_v25 }
 0x207   :  { %v708_v28 = vpop.xlane.xlu0 %707 }
 0x208   :  { %1523 = vrcp.f32 %v708_v28 }
 0x20b   :  { %v711_v29 = vpop.xlane.xlu1 %710 }
 0x20c   :  { %1525 = vrcp.f32 %v711_v29  ;;  %v714_v30 = vpop.xlane.xlu0 %713 }
 0x20d   :  { %1527 = vrcp.f32 %v714_v30 }
 0x20f   :  { %v717_v31 = vpop.xlane.xlu1 %716 }
 0x210   :  { %1529 = vrcp.f32 %v717_v31  ;;  %v720_v32 = vpop.xlane.xlu0 %719 }
 0x211   :  { %1531 = vrcp.f32 %v720_v32 }
 0x212   :  { %v1524_v33 = vpop.eup %1523 }
 0x213   :  { %v738_v34 = vmul.f32 %v1524_v33, %v1508_v5  ;;  %v723_v35 = vpop.xlane.xlu1 %722 }
 0x214   :  { %1533 = vrcp.f32 %v723_v35  ;;  %v726_v37 = vpop.xlane.xlu0 %725 }
 0x215   :  { %746 = vst.msk [vmem:[#allocation2] sm:$0xff] %vm41_vm0, %v738_v34  ;;  %1535 = vrcp.f32 %v726_v37  ;;  %1465 = vmatmul.mubr.msk.f32.vlgmr.msra.gmra.mrb[8].mxu0 %vm41_vm0, %v738_v34 }
 0x216   :  { %v1526_v38 = vpop.eup %1525  ;;  %1473 = vmatpush3.msra.mxu0 %v35_v36  ;;  %1474 = vmatprep.mubr.msk.f32.mxu0 %vm1564_vm1, %v1563_v2 }
 0x217   :  { %v1528_v39 = vpop.eup %1527  ;;  %v739_v40 = vmul.f32 %v1526_v38, %v1510_v11  ;;  %v729_v41 = vpop.xlane.xlu1 %728  ;;  %1482 = vmatprep.subr.mxu0 %v1563_v2 }
 0x218   :  { %v740_v43 = vmul.f32 %v1528_v39, %v1512_v13  ;;  %1537 = vrcp.f32 %v729_v41 }
 0x219   :  { %747 = vst.msk [vmem:[#allocation2 + $0x8] sm:$0xff] %vm41_vm0, %v739_v40  ;;  %1470 = vmatmul.mubr.msk.f32.vlgmr.msra.gmra.mrb[8].mxu1 %vm41_vm0, %v739_v40 }
 0x21a   :  { %v1530_v45 = vpop.eup %1529  ;;  %748 = vst.msk [vmem:[#allocation2 + $0x10] sm:$0xff] %vm41_vm0, %v740_v43  ;;  %1475 = vmatmul.mubr.msk.f32.vlgmr.msra.gmra.mrb[10].mxu0 %vm41_vm0, %v740_v43  ;;  %1478 = vmatpush3.msra.mxu1 %v36_v42 }
 0x21b   :  { %v1532_v46 = vpop.eup %1531  ;;  %v741_v47 = vmul.f32 %v1530_v45, %v1514_v16  ;;  %1479 = vmatprep.mubr.msk.f32.mxu1 %vm1564_vm1, %v1563_v2  ;;  %1483 = vmatpush3.msra.mxu0 %v37_v44 }
 0x21c   :  { %v742_v49 = vmul.f32 %v1532_v46, %v1516_v17  ;;  %1484 = vmatprep.mubr.msk.f32.mxu0 %vm1564_vm1, %v1563_v2  ;;  %1487 = vmatprep.subr.mxu1 %v1563_v2 }
 0x21d   :  { %749 = vst.msk [vmem:[#allocation2 + $0x18] sm:$0xff] %vm41_vm0, %v741_v47  ;;  %1480 = vmatmul.mubr.msk.f32.vlgmr.msra.gmra.mrb[10].mxu1 %vm41_vm0, %v741_v47  ;;  %1492 = vmatprep.subr.mxu0 %v1563_v2 }
 0x21e   :  { %v1534_v51 = vpop.eup %1533  ;;  %750 = vst.msk [vmem:[#allocation2 + $0x20] sm:$0xff] %vm41_vm0, %v742_v49  ;;  %1485 = vmatmul.mubr.msk.f32.vlgmr.msra.gmra.mrb[12].mxu0 %vm41_vm0, %v742_v49  ;;  %1488 = vmatpush3.msra.mxu1 %v38_v48 }
 0x21f   :  { %v1536_v52 = vpop.eup %1535  ;;  %v743_v53 = vmul.f32 %v1534_v51, %v1700_v20  ;;  %1489 = vmatprep.mubr.msk.f32.mxu1 %vm1564_vm1, %v1563_v2  ;;  %1493 = vmatpush3.msra.mxu0 %v39_v50 }
 0x220   :  { %v744_v55 = vmul.f32 %v1536_v52, %v1702_v21  ;;  %1494 = vmatprep.mubr.msk.f32.mxu0 %vm1564_vm1, %v1563_v2  ;;  %1497 = vmatprep.subr.mxu1 %v1563_v2 }
 0x221   :  { %751 = vst.msk [vmem:[#allocation2 + $0x28] sm:$0xff] %vm41_vm0, %v743_v53  ;;  %1490 = vmatmul.mubr.msk.f32.vlgmr.msra.gmra.mrb[12].mxu1 %vm41_vm0, %v743_v53 }
 0x222   :  { %v1538_v56 = vpop.eup %1537  ;;  %752 = vst.msk [vmem:[#allocation2 + $0x30] sm:$0xff] %vm41_vm0, %v744_v55  ;;  %1495 = vmatmul.mubr.msk.f32.vlgmr.msra.gmra.mrb[14].mxu0 %vm41_vm0, %v744_v55  ;;  %1498 = vmatpush3.msra.mxu1 %v40_v54 }
 0x223   :  { %v745_v57 = vmul.f32 %v1538_v56, %v1708_v24  ;;  %1499 = vmatprep.mubr.msk.f32.mxu1 %vm1564_vm1, %v1563_v2 }
 0x225   :  { %753 = vst.msk [vmem:[#allocation2 + $0x38] sm:$0xff] %vm41_vm0, %v745_v57  ;;  %1500 = vmatmul.mubr.msk.f32.vlgmr.msra.gmra.mrb[14].mxu1 %vm41_vm0, %v745_v57 }
 0x226   :  { %1550 = shalt.err (!%p1547_p4)
}
 0x227   :  { %s1551_s13 = scalar_lea.hbm %s1821_s4, 1024 }
 0x228   :  { %p1552_p5 = scmp.ne.s32.totalorder %s1821_s4, %s1551_s13  ;;  %p1555_p6 = scmp.lt.u32.totalorder %s1551_s13, %s1821_s4 }
 0x22a   :  { %p1557_p7 = pnand %p1555_p6, %p1552_p5 }
 0x22c   :  { %1560 = shalt.err (!%p1557_p7)
}
 0x22d   :  { %s1566_s18 = smov 128   ;;  %s1567_s19 = smov 8  }
 0x22e   :  { %1359 = dma.vmem_to_hbm [thread:$0]  %s1354_s9, 1024, %s1821_s4, [#allocation3], %s1566_s18, %s1566_s18, %s1567_s19  }
 0x2e8   :  { %v823_v2 = vpop.f32.mrb[8].mxu0 }
 0x2e9   :  { %1338 = vst.msk [vmem:[%s1820_s3] sm:$0xff] %vm41_vm0, %v823_v2  ;;  %v1466_v58 = vpop.f32.mrb[9].mxu0 }
 0x2ec   :  { %v896_v59 = vpop.f32.mrb[8].mxu1 }
 0x2ed   :  { %1339 = vst.msk [vmem:[%s1820_s3 + $0x8] sm:$0xff] %vm41_vm0, %v896_v59  ;;  %v969_v60 = vpop.f32.mrb[10].mxu0  ;;  %v1471_v61 = vpop.f32.mrb[9].mxu1 }
 0x2ee   :  { %1340 = vst.msk [vmem:[%s1820_s3 + $0x10] sm:$0xff] %vm41_vm0, %v969_v60  ;;  %v1476_v62 = vpop.f32.mrb[11].mxu0 }
 0x2f0   :  { %v1042_v63 = vpop.f32.mrb[10].mxu1 }
 0x2f1   :  { %1341 = vst.msk [vmem:[%s1820_s3 + $0x18] sm:$0xff] %vm41_vm0, %v1042_v63  ;;  %v1115_v0 = vpop.f32.mrb[12].mxu0  ;;  %v1481_v1 = vpop.f32.mrb[11].mxu1 }
 0x2f2   :  { %1342 = vst.msk [vmem:[%s1820_s3 + $0x20] sm:$0xff] %vm41_vm0, %v1115_v0  ;;  %v1486_v3 = vpop.f32.mrb[13].mxu0 }
 0x2f4   :  { %v1188_v4 = vpop.f32.mrb[12].mxu1 }
 0x2f5   :  { %1343 = vst.msk [vmem:[%s1820_s3 + $0x28] sm:$0xff] %vm41_vm0, %v1188_v4  ;;  %v1261_v5 = vpop.f32.mrb[14].mxu0  ;;  %v1491_v6 = vpop.f32.mrb[13].mxu1 }
 0x2f6   :  { %1344 = vst.msk [vmem:[%s1820_s3 + $0x30] sm:$0xff] %vm41_vm0, %v1261_v5  ;;  %v1496_v7 = vpop.f32.mrb[15].mxu0 }
 0x2f8   :  { %v1334_v8 = vpop.f32.mrb[14].mxu1 }
 0x2f9   :  { %1345 = vst.msk [vmem:[%s1820_s3 + $0x38] sm:$0xff] %vm41_vm0, %v1334_v8  ;;  %v1501_v9 = vpop.f32.mrb[15].mxu1 }
 0x2fa   :  { %1561 = dma.done.wait [#allocation3], 1024  }
 0x2fb   :  { %1562 = vsyncadd [#allocation3], 4294966272 }
 0x2fc   :  { %1365 = vsyncpa [#allocation3], 1 }

</bundles_post_ra>
